<compile_context>
chip_gen: v7x
topology: tpu7x:2x2x1
jax: 0.10.0
libtpu: 0.0.40
codegen_flags: <defaults>
</compile_context>

<pallas_src>
import functools

import jax
import jax.numpy as jnp
from jax.experimental import pallas as pl
from jax.experimental.pallas import tpu as pltpu

H1_PAD = 512          # 400 padded up to a lane multiple
H2_PAD = 384          # 300 padded up; keep at 384 (3 exact MXU passes on v5e)
MAX_BATCH_TILE = 1024 # biggest batch tile (sweepable: 512 / 1024 / 2048)


def _round_up(x: int, m: int) -> int:
    return ((x + m - 1) // m) * m


def _cdiv(a: int, b: int) -> int:
    return (a + b - 1) // b


def make_actor_kernel(max_action: float):
    def actor_kernel(x_ref, w1_ref, b1_ref, w2_ref, b2_ref, w3_ref, b3_ref, out_ref):
        # Layer 1: bf16 MXU inputs (x already bf16 from the wrapper), f32 acc.
        h1 = jnp.dot(x_ref[...], w1_ref[...], preferred_element_type=jnp.float32)
        h1 = jnp.maximum(h1 + b1_ref[...], 0.0)
        # Layer 2.
        h2 = jnp.dot(h1.astype(jnp.bfloat16), w2_ref[...],
                     preferred_element_type=jnp.float32)
        h2 = jnp.maximum(h2 + b2_ref[...], 0.0)
        # Layer 3: max_action * tanh, all in f32; native action_dim width store.
        h3 = jnp.dot(h2.astype(jnp.bfloat16), w3_ref[...],
                     preferred_element_type=jnp.float32)
        out_ref[...] = (max_action * jnp.tanh(h3 + b3_ref[...])).astype(out_ref.dtype)

    return actor_kernel


def init_actor_params(key, state_dim: int, action_dim: int):
    """Raw f32 parameters in PyTorch nn.Linear layout: weight (out, in), bias (out,)."""
    k1, k2, k3, k4, k5, k6 = jax.random.split(key, 6)
    return {
        "w1": jax.random.normal(k1, (400, state_dim), jnp.float32) * 0.05,
        "b1": jax.random.normal(k2, (400,), jnp.float32) * 0.05,
        "w2": jax.random.normal(k3, (300, 400), jnp.float32) * 0.05,
        "b2": jax.random.normal(k4, (300,), jnp.float32) * 0.05,
        "w3": jax.random.normal(k5, (action_dim, 300), jnp.float32) * 0.05,
        "b3": jax.random.normal(k6, (action_dim,), jnp.float32) * 0.05,
    }


def pack_actor_params(raw):
    """Pad hidden dims, transpose to (in, out), cast weights to bf16. Biases stay f32."""
    state_dim = raw["w1"].shape[1]
    action_dim = raw["w3"].shape[0]

    def pad2(a, rows, cols):
        out = jnp.zeros((rows, cols), a.dtype)
        return out.at[: a.shape[0], : a.shape[1]].set(a)

    return {
        "w1_t": pad2(raw["w1"].T, state_dim, H1_PAD).astype(jnp.bfloat16),
        "b1": pad2(raw["b1"].reshape(1, -1), 1, H1_PAD),
        "w2_t": pad2(raw["w2"].T, H1_PAD, H2_PAD).astype(jnp.bfloat16),
        "b2": pad2(raw["b2"].reshape(1, -1), 1, H2_PAD),
        # Layer-3 output dim is left at its native width (full-extent block).
        "w3_t": pad2(raw["w3"].T, H2_PAD, action_dim).astype(jnp.bfloat16),
        "b3": raw["b3"].reshape(1, action_dim),
    }


@functools.partial(jax.jit, static_argnames=("max_action", "action_dim"))
def actor_forward(x, packed, *, max_action: float, action_dim: int):
    """x: (B, state_dim) f32. packed: output of pack_actor_params. Returns (B, action_dim) f32."""
    B, S = x.shape

    # Cast x to bf16 host-side: halves the x DMA, MXU consumes bf16 anyway.
    x = x.astype(jnp.bfloat16)

    # Batch tiling:
    #  * B <= 256: a single padded tile (tb == b_pad, so full-extent blocks).
    #  * B  > 256: tile is a multiple of 256, capped at MAX_BATCH_TILE, and
    #    capped at ~half the batch so the "parallel" grid has >= 2 steps
    #    (keeps both v7x TensorCores busy for medium batches).
    if B <= 256:
        tb = _round_up(max(B, 8), 16)
        b_pad = tb
    else:
        b_half = _round_up(_cdiv(_round_up(B, 256), 2), 256)
        tb = min(MAX_BATCH_TILE, b_half)
        b_pad = _round_up(B, tb)

    if b_pad != B:
        x = jnp.zeros((b_pad, S), x.dtype).at[:B].set(x)

    grid = (b_pad // tb,)
    kernel = make_actor_kernel(max_action)
    const = lambda i: (0, 0)  # resident operands: fetched once, kept in VMEM

    # Advisory cost hint for XLA's scheduler around the custom call.
    flops = 2 * b_pad * (S * H1_PAD + H1_PAD * H2_PAD + H2_PAD * action_dim)
    transcendentals = b_pad * action_dim  # tanh
    bytes_accessed = (
        b_pad * S * 2                                   # x (bf16)
        + S * H1_PAD * 2 + H1_PAD * 4                   # w1_t + b1
        + H1_PAD * H2_PAD * 2 + H2_PAD * 4              # w2_t + b2
        + H2_PAD * action_dim * 2 + action_dim * 4      # w3_t + b3
        + b_pad * action_dim * 4                        # out (f32)
    )
    cost = pl.CostEstimate(flops=flops, transcendentals=transcendentals,
                           bytes_accessed=bytes_accessed)

    out = pl.pallas_call(
        kernel,
        out_shape=jax.ShapeDtypeStruct((b_pad, action_dim), jnp.float32),
        grid=grid,
        in_specs=[
            pl.BlockSpec((tb, S), lambda i: (i, 0)),       # x tile (pipelined)
            pl.BlockSpec((S, H1_PAD), const),              # w1_t (resident)
            pl.BlockSpec((1, H1_PAD), const),              # b1
            pl.BlockSpec((H1_PAD, H2_PAD), const),         # w2_t (resident)
            pl.BlockSpec((1, H2_PAD), const),              # b2
            pl.BlockSpec((H2_PAD, action_dim), const),     # w3_t (resident, native width)
            pl.BlockSpec((1, action_dim), const),          # b3
        ],
        out_specs=pl.BlockSpec((tb, action_dim), lambda i: (i, 0)),
        compiler_params=pltpu.CompilerParams(
            dimension_semantics=("parallel",),             # 2x on v7x dual TC
            vmem_limit_bytes=32 * 1024 * 1024,             # safe headroom for tb=1024
        ),
        cost_estimate=cost,
    )(
        x,
        packed["w1_t"], packed["b1"],
        packed["w2_t"], packed["b2"],
        packed["w3_t"], packed["b3"],
    )
    if b_pad != B:
        out = out[:B]
    return out


def actor_reference(x, raw, max_action: float):
    """Pure-JAX f32 reference matching the PyTorch module."""
    h = jnp.maximum(x @ raw["w1"].T + raw["b1"], 0.0)
    h = jnp.maximum(h @ raw["w2"].T + raw["b2"], 0.0)
    return max_action * jnp.tanh(h @ raw["w3"].T + raw["b3"])


if __name__ == "__main__":
    state_dim = 16
    action_dim = 4
    max_action = 2.0

    key = jax.random.PRNGKey(0)
    kx1, kx2, kp = jax.random.split(key, 3)
    raw_params = init_actor_params(kp, state_dim, action_dim)
    packed_params = pack_actor_params(raw_params)

    # Small batch (single-tile path).
    x_small = jax.random.normal(kx1, (2, state_dim), jnp.float32)
    out_small = actor_forward(x_small, packed_params,
                              max_action=max_action, action_dim=action_dim)
    out_small = jax.block_until_ready(out_small)
    ref_small = actor_reference(x_small, raw_params, max_action)
    assert out_small.shape == (2, action_dim)
    assert jnp.allclose(out_small, ref_small, atol=3e-2, rtol=3e-2), "small-batch mismatch"

    # Larger batch (multi-step grid / dual-TC path).
    x_big = jax.random.normal(kx2, (512, state_dim), jnp.float32)
    out_big = actor_forward(x_big, packed_params,
                            max_action=max_action, action_dim=action_dim)
    out_big = jax.block_until_ready(out_big)
    ref_big = actor_reference(x_big, raw_params, max_action)
    assert out_big.shape == (512, action_dim)
    assert jnp.allclose(out_big, ref_big, atol=3e-2, rtol=3e-2), "large-batch mismatch"

    print("KERNEL_OK")
</pallas_src>

<mosaic_0001>
module attributes {stable_mosaic.version = 11 : i64} {
  func.func @actor_kernel(%arg0: i32, %arg1: memref<16x16xbf16, #tpu.memory_space<vmem>>, %arg2: memref<16x512xbf16, #tpu.memory_space<vmem>>, %arg3: memref<1x512xf32, #tpu.memory_space<vmem>>, %arg4: memref<512x384xbf16, #tpu.memory_space<vmem>>, %arg5: memref<1x384xf32, #tpu.memory_space<vmem>>, %arg6: memref<384x4xbf16, #tpu.memory_space<vmem>>, %arg7: memref<1x4xf32, #tpu.memory_space<vmem>>, %arg8: memref<16x4xf32, #tpu.memory_space<vmem>>) attributes {dimension_semantics = [#tpu.dimension_semantics<parallel>], iteration_bounds = array<i64: 1>, scalar_prefetch = 0 : i64, scratch_operands = 0 : i64, tpu.core_type = #tpu.core_type<tc>, window_params = [{transform_indices = @transform_0, window_bounds = array<i64: 16, 16>}, {pipeline_mode = #tpu.pipeline_mode<synchronous>, transform_indices = @transform_1, window_bounds = array<i64: 16, 512>}, {pipeline_mode = #tpu.pipeline_mode<synchronous>, transform_indices = @transform_2, window_bounds = array<i64: 1, 512>}, {pipeline_mode = #tpu.pipeline_mode<synchronous>, transform_indices = @transform_3, window_bounds = array<i64: 512, 384>}, {pipeline_mode = #tpu.pipeline_mode<synchronous>, transform_indices = @transform_4, window_bounds = array<i64: 1, 384>}, {pipeline_mode = #tpu.pipeline_mode<synchronous>, transform_indices = @transform_5, window_bounds = array<i64: 384, 4>}, {pipeline_mode = #tpu.pipeline_mode<synchronous>, transform_indices = @transform_6, window_bounds = array<i64: 1, 4>}, {transform_indices = @transform_7, window_bounds = array<i64: 16, 4>}]} {
    %c0 = arith.constant 0 : index
    %c0_0 = arith.constant 0 : index
    %0 = vector.load %arg1[%c0, %c0_0] : memref<16x16xbf16, #tpu.memory_space<vmem>>, vector<16x16xbf16>
    %c0_1 = arith.constant 0 : index
    %c0_2 = arith.constant 0 : index
    %1 = vector.load %arg2[%c0_1, %c0_2] : memref<16x512xbf16, #tpu.memory_space<vmem>>, vector<16x512xbf16>
    %cst = arith.constant dense<0.000000e+00> : vector<16x512xf32>
    %2 = tpu.matmul %0, %1, %cst {dimension_numbers = #tpu.dot_dimension_numbers<[1], [0], [0], [1], [0, 0, 1, 1], [], []>} : vector<16x16xbf16>, vector<16x512xbf16>, vector<16x512xf32> -> vector<16x512xf32>
    %c0_3 = arith.constant 0 : index
    %c0_4 = arith.constant 0 : index
    %3 = vector.load %arg3[%c0_3, %c0_4] : memref<1x512xf32, #tpu.memory_space<vmem>>, vector<1x512xf32>
    %4 = vector.broadcast %3 : vector<1x512xf32> to vector<16x512xf32>
    %5 = arith.addf %2, %4 : vector<16x512xf32>
    %cst_5 = arith.constant 0.000000e+00 : f32
    %6 = vector.broadcast %cst_5 : f32 to vector<16x512xf32>
    %7 = arith.maximumf %5, %6 : vector<16x512xf32>
    %8 = arith.truncf %7 : vector<16x512xf32> to vector<16x512xbf16>
    %c0_6 = arith.constant 0 : index
    %c0_7 = arith.constant 0 : index
    %9 = vector.load %arg4[%c0_6, %c0_7] : memref<512x384xbf16, #tpu.memory_space<vmem>>, vector<512x384xbf16>
    %cst_8 = arith.constant dense<0.000000e+00> : vector<16x384xf32>
    %10 = tpu.matmul %8, %9, %cst_8 {dimension_numbers = #tpu.dot_dimension_numbers<[1], [0], [0], [1], [0, 0, 1, 1], [], []>} : vector<16x512xbf16>, vector<512x384xbf16>, vector<16x384xf32> -> vector<16x384xf32>
    %c0_9 = arith.constant 0 : index
    %c0_10 = arith.constant 0 : index
    %11 = vector.load %arg5[%c0_9, %c0_10] : memref<1x384xf32, #tpu.memory_space<vmem>>, vector<1x384xf32>
    %12 = vector.broadcast %11 : vector<1x384xf32> to vector<16x384xf32>
    %13 = arith.addf %10, %12 : vector<16x384xf32>
    %cst_11 = arith.constant 0.000000e+00 : f32
    %14 = vector.broadcast %cst_11 : f32 to vector<16x384xf32>
    %15 = arith.maximumf %13, %14 : vector<16x384xf32>
    %16 = arith.truncf %15 : vector<16x384xf32> to vector<16x384xbf16>
    %c0_12 = arith.constant 0 : index
    %c0_13 = arith.constant 0 : index
    %17 = vector.load %arg6[%c0_12, %c0_13] : memref<384x4xbf16, #tpu.memory_space<vmem>>, vector<384x4xbf16>
    %cst_14 = arith.constant dense<0.000000e+00> : vector<16x4xf32>
    %18 = tpu.matmul %16, %17, %cst_14 {dimension_numbers = #tpu.dot_dimension_numbers<[1], [0], [0], [1], [0, 0, 1, 1], [], []>} : vector<16x384xbf16>, vector<384x4xbf16>, vector<16x4xf32> -> vector<16x4xf32>
    %c0_15 = arith.constant 0 : index
    %c0_16 = arith.constant 0 : index
    %19 = vector.load %arg7[%c0_15, %c0_16] : memref<1x4xf32, #tpu.memory_space<vmem>>, vector<1x4xf32>
    %20 = vector.broadcast %19 : vector<1x4xf32> to vector<16x4xf32>
    %21 = arith.addf %18, %20 : vector<16x4xf32>
    %22 = math.tanh %21 : vector<16x4xf32>
    %cst_17 = arith.constant 2.000000e+00 : f32
    %23 = vector.broadcast %cst_17 : f32 to vector<16x4xf32>
    %24 = arith.mulf %23, %22 : vector<16x4xf32>
    %c0_18 = arith.constant 0 : index
    %c0_19 = arith.constant 0 : index
    %25 = vector.load %arg8[%c0_18, %c0_19] : memref<16x4xf32, #tpu.memory_space<vmem>>, vector<16x4xf32>
    tpu.vector_store %arg8[%c0_18, %c0_19], %24 {strides = array<i32>} : memref<16x4xf32, #tpu.memory_space<vmem>>, vector<16x4xf32>,
    return
  }
  func.func @transform_0(%arg0: i32) -> (i32, i32) {
    %c0_i32 = arith.constant 0 : i32
    %c0_i32_0 = arith.constant 0 : i32
    return %arg0, %c0_i32 : i32, i32
  }
  func.func @transform_1(%arg0: i32) -> (i32, i32) {
    %c0_i32 = arith.constant 0 : i32
    %c0_i32_0 = arith.constant 0 : i32
    %c0_i32_1 = arith.constant 0 : i32
    return %c0_i32, %c0_i32_0 : i32, i32
  }
  func.func @transform_2(%arg0: i32) -> (i32, i32) {
    %c0_i32 = arith.constant 0 : i32
    %c0_i32_0 = arith.constant 0 : i32
    %c0_i32_1 = arith.constant 0 : i32
    return %c0_i32, %c0_i32_0 : i32, i32
  }
  func.func @transform_3(%arg0: i32) -> (i32, i32) {
    %c0_i32 = arith.constant 0 : i32
    %c0_i32_0 = arith.constant 0 : i32
    %c0_i32_1 = arith.constant 0 : i32
    return %c0_i32, %c0_i32_0 : i32, i32
  }
  func.func @transform_4(%arg0: i32) -> (i32, i32) {
    %c0_i32 = arith.constant 0 : i32
    %c0_i32_0 = arith.constant 0 : i32
    %c0_i32_1 = arith.constant 0 : i32
    return %c0_i32, %c0_i32_0 : i32, i32
  }
  func.func @transform_5(%arg0: i32) -> (i32, i32) {
    %c0_i32 = arith.constant 0 : i32
    %c0_i32_0 = arith.constant 0 : i32
    %c0_i32_1 = arith.constant 0 : i32
    return %c0_i32, %c0_i32_0 : i32, i32
  }
  func.func @transform_6(%arg0: i32) -> (i32, i32) {
    %c0_i32 = arith.constant 0 : i32
    %c0_i32_0 = arith.constant 0 : i32
    %c0_i32_1 = arith.constant 0 : i32
    return %c0_i32, %c0_i32_0 : i32, i32
  }
  func.func @transform_7(%arg0: i32) -> (i32, i32) {
    %c0_i32 = arith.constant 0 : i32
    %c0_i32_0 = arith.constant 0 : i32
    return %arg0, %c0_i32 : i32, i32
  }
}

</mosaic_0001>

<bundles_post_ra>
// kernel: actor_forward.1
= control target key start
LH: loop header
LB: loop body
LE: loop exit
PB: predicated region body
PF: predicated region fallthrough
CT: control target
= control target key end

     0   :  { %12 = vsyncpa [#allocation3], 0  ;;  %s1747_s24 = smov [#allocation2]   ;;  %s1938_s0 = inlined_call_operand.vmem [shape: bf16[16,16], index: 0, kind: input, shape index: {}]   ;;  %s1939_s1 = inlined_call_operand.vmem [shape: bf16[16,512], index: 1, kind: input, shape index: {}]   ;;  %s1940_s2 = inlined_call_operand.vmem [shape: f32[1,512], index: 2, kind: input, shape index: {}]   ;;  %s1941_s3 = inlined_call_operand.hbm [shape: bf16[512,384], index: 3, kind: input, shape index: {}]   ;;  %s1942_s4 = inlined_call_operand.vmem [shape: f32[1,384], index: 4, kind: input, shape index: {}]   ;;  %s1943_s5 = inlined_call_operand.vmem [shape: bf16[384,4], index: 5, kind: input, shape index: {}]   ;;  %s1944_s6 = inlined_call_operand.vmem [shape: f32[1,4], index: 6, kind: input, shape index: {}]   ;;  %s1945_s7 = inlined_call_operand.vmem [shape: f32[16,4], index: 7, kind: output, shape index: {}]  }
   0x1   :  { %s24_s25 = sshll.u32 %s1747_s24, 4  ;;  %s1723_s28 = scalar_lea.hbm %s1941_s3, 12288  ;;  %s25_s25 = int_to_ptr.vmem [resolvable:$true] %s24_s25 }
   0x2   :  { %p1724_p0 = scmp.ne.s32.totalorder %s1941_s3, %s1723_s28  ;;  %p1727_p1 = scmp.lt.u32.totalorder %s1723_s28, %s1941_s3 }
   0x4   :  { %p1729_p2 = pnand %p1727_p1, %p1724_p0 }
   0x6   :  { %1732 = shalt.err (!%p1729_p2)
}
   0x7   :  { %s1733_s10 = scalar_lea.vmem %s25_s25, 12288  ;;  %p1738_p4 = scmp.lt.s32.totalorder %s25_s25, %s25_s25 }
   0x8   :  { %p1734_p3 = scmp.ne.s32.totalorder %s25_s25, %s1733_s10  ;;  %p1739_p5 = scmp.lt.s32.totalorder %s1733_s10, %s1733_s10 }
   0xa   :  { %p1740_p6 = por %p1739_p5, %p1738_p4 }
   0xc   :  { %p1741_p7 = pnand %p1740_p6, %p1734_p3 }
   0xe   :  { %1744 = shalt.err (!%p1741_p7)
}
   0xf   :  { %s1748_s11 = smov 192   ;;  %s1749_s12 = smov 12  }
  0x10   :  { %30 = dma.hbm_to_vmem [thread:$0]  %s1941_s3, 12288, %s25_s25, [#allocation3], %s1748_s11, %s1748_s11, %s1749_s12  }
  0x11   :  { %1745 = dma.done.wait [#allocation3], 12288  }
  0x12   :  { %1746 = vsyncadd [#allocation3], 4294955008  ;;  %v1750_v0 = vmov 0   ;;  %v1560_v1 = vld [vmem:[%s1939_s1 + $0x4] ss:$16 sps:$4 sm:$0xff]   ;;  %vm94_vm0 = vcmask 130048   ;;  %v49_v56 = vlaneseq }
  0x13   :  { %130 = vmatprep.mubr.bf16.mxu0 %v1750_v0  ;;  %173 = vmatprep.mubr.bf16.mxu1 %v1750_v0  ;;  %v1562_v2 = vld [vmem:[%s1939_s1] ss:$16 sps:$4 sm:$0xff]   ;;  %v1564_v4 = vld [vmem:[%s1939_s1 + $0xc] ss:$16 sps:$4 sm:$0xff]   ;;  %v1566_v5 = vld [vmem:[%s1939_s1 + $0x8] ss:$16 sps:$4 sm:$0xff]  }
  0x14   :  { %98 = vmatprep.subr.bf16.mxu0 %v1560_v1  ;;  %v1563_v3 = vld [vmem:[%s1938_s0] sm:$0xff]   ;;  %141 = vmatprep.subr.bf16.mxu1 %v1564_v4  ;;  %v1572_v8 = vld [vmem:[#allocation2 + $0x1c] ss:$12 sps:$4 sm:$0xff]   ;;  %v1578_v12 = vld [vmem:[#allocation2 + $0x4c] ss:$12 sps:$4 sm:$0xff]   ;;  %v1820_v57 = vshrl.u32 %v49_v56, 7 }
  0x15   :  { %99 = vmatpush1.bf16.msra.mxu0 %v1562_v2  ;;  %v1567_v6 = vld [vmem:[#allocation2] ss:$12 sps:$4 sm:$0xff]   ;;  %v1569_v7 = vld [vmem:[#allocation2 + $0x4] ss:$12 sps:$4 sm:$0xff]   ;;  %142 = vmatpush1.bf16.msra.mxu1 %v1566_v5  ;;  %v1576_v13 = vld [vmem:[#allocation2 + $0x48] ss:$12 sps:$4 sm:$0xff]  }
  0x16   :  { %853 = vmatprep.subr.bf16.mxu0 %v1569_v7  ;;  %v1570_v9 = vld [vmem:[#allocation2 + $0x18] ss:$12 sps:$4 sm:$0xff]   ;;  %v1575_v10 = vld [vmem:[#allocation2 + $0x34] ss:$12 sps:$4 sm:$0xff]   ;;  %v1573_v11 = vld [vmem:[#allocation2 + $0x30] ss:$12 sps:$4 sm:$0xff]  }
  0x17   :  { %v1581_v14 = vld [vmem:[#allocation2 + $0x64] ss:$12 sps:$4 sm:$0xff]   ;;  %v1594_v15 = vld [vmem:[#allocation2 + $0xc8] ss:$12 sps:$4 sm:$0xff]   ;;  %v1579_v17 = vld [vmem:[#allocation2 + $0x60] ss:$12 sps:$4 sm:$0xff]  }
  0x18   :  { %1328 = vmatmul.mubr.msk.bf16.vlgmr.msra.gmra.mrb[0].mxu0 %vm94_vm0, %v1563_v3  ;;  %1329 = vmatmul.mubr.msk.bf16.vlgmr.msra.gmra.mrb[0].mxu1 %vm94_vm0, %v1563_v3  ;;  %v1595_v16 = vld [vmem:[#allocation2 + $0x8] ss:$12 sps:$4 sm:$0xff]   ;;  %v1599_v18 = vld [vmem:[#allocation2 + $0xe0] ss:$12 sps:$4 sm:$0xff]   ;;  %v1582_v21 = vld [vmem:[#allocation2 + $0x78] ss:$12 sps:$4 sm:$0xff]  }
  0x19   :  { %854 = vmatpush1.bf16.msra.mxu0 %v1567_v6  ;;  %1451 = vmatprep.subr.bf16.mxu1 %v1594_v15  ;;  %v1600_v19 = vld [vmem:[#allocation2 + $0x20] ss:$12 sps:$4 sm:$0xff]   ;;  %v1584_v20 = vld [vmem:[#allocation2 + $0x7c] ss:$12 sps:$4 sm:$0xff]   ;;  %v1604_v22 = vld [vmem:[#allocation2 + $0xf8] ss:$12 sps:$4 sm:$0xff]  }
  0x1a   :  { %855 = vmatprep.subr.bf16.mxu0 %v1572_v8  ;;  %1452 = vmatpush3.bf16.msra.mxu1 %v1595_v16  ;;  %v1605_v23 = vld [vmem:[#allocation2 + $0x38] ss:$12 sps:$4 sm:$0xff]   ;;  %v1587_v24 = vld [vmem:[#allocation2 + $0x94] ss:$12 sps:$4 sm:$0xff]   ;;  %v1609_v25 = vld [vmem:[#allocation2 + $0x110] ss:$12 sps:$4 sm:$0xff]  }
  0x1b   :  { %1453 = vmatprep.subr.bf16.mxu1 %v1599_v18  ;;  %v1610_v26 = vld [vmem:[#allocation2 + $0x50] ss:$12 sps:$4 sm:$0xff]   ;;  %v1590_v28 = vld [vmem:[#allocation2 + $0xac] ss:$12 sps:$4 sm:$0xff]   ;;  %v1614_v29 = vld [vmem:[#allocation2 + $0x128] ss:$12 sps:$4 sm:$0xff]  }
  0x1c   :  { %v1585_v27 = vld [vmem:[#allocation2 + $0x90] ss:$12 sps:$4 sm:$0xff]   ;;  %v1588_v30 = vld [vmem:[#allocation2 + $0xa8] ss:$12 sps:$4 sm:$0xff]   ;;  %v1619_v33 = vld [vmem:[#allocation2 + $0x140] ss:$12 sps:$4 sm:$0xff]  }
  0x1d   :  { %856 = vmatpush1.bf16.msra.mxu0 %v1570_v9  ;;  %v1615_v31 = vld [vmem:[#allocation2 + $0x68] ss:$12 sps:$4 sm:$0xff]   ;;  %v1593_v32 = vld [vmem:[#allocation2 + $0xc4] ss:$12 sps:$4 sm:$0xff]   ;;  %v1591_v34 = vld [vmem:[#allocation2 + $0xc0] ss:$12 sps:$4 sm:$0xff]  }
  0x1e   :  { %857 = vmatprep.subr.bf16.mxu0 %v1575_v10  ;;  %1454 = vmatpush3.bf16.msra.mxu1 %v1600_v19  ;;  %v1620_v35 = vld [vmem:[#allocation2 + $0x80] ss:$12 sps:$4 sm:$0xff]   ;;  %v1598_v36 = vld [vmem:[#allocation2 + $0xdc] ss:$12 sps:$4 sm:$0xff]   ;;  %v1596_v37 = vld [vmem:[#allocation2 + $0xd8] ss:$12 sps:$4 sm:$0xff]  }
  0x1f   :  { %1455 = vmatprep.subr.bf16.mxu1 %v1604_v22  ;;  %v1603_v38 = vld [vmem:[#allocation2 + $0xf4] ss:$12 sps:$4 sm:$0xff]   ;;  %v1601_v39 = vld [vmem:[#allocation2 + $0xf0] ss:$12 sps:$4 sm:$0xff]   ;;  %v1608_v40 = vld [vmem:[#allocation2 + $0x10c] ss:$12 sps:$4 sm:$0xff]  }
  0x20   :  { %v1606_v41 = vld [vmem:[#allocation2 + $0x108] ss:$12 sps:$4 sm:$0xff]   ;;  %v1613_v42 = vld [vmem:[#allocation2 + $0x124] ss:$12 sps:$4 sm:$0xff]   ;;  %v1611_v43 = vld [vmem:[#allocation2 + $0x120] ss:$12 sps:$4 sm:$0xff]  }
  0x21   :  { %858 = vmatpush1.bf16.msra.mxu0 %v1573_v11  ;;  %v1618_v44 = vld [vmem:[#allocation2 + $0x13c] ss:$12 sps:$4 sm:$0xff]   ;;  %v1616_v45 = vld [vmem:[#allocation2 + $0x138] ss:$12 sps:$4 sm:$0xff]   ;;  %v1623_v46 = vld [vmem:[#allocation2 + $0x154] ss:$12 sps:$4 sm:$0xff]  }
  0x22   :  { %859 = vmatprep.subr.bf16.mxu0 %v1578_v12  ;;  %1456 = vmatpush3.bf16.msra.mxu1 %v1605_v23  ;;  %v1624_v47 = vld [vmem:[#allocation2 + $0x158] ss:$12 sps:$4 sm:$0xff]   ;;  %v1621_v48 = vld [vmem:[#allocation2 + $0x150] ss:$12 sps:$4 sm:$0xff]   ;;  %v1626_v52 = vld [vmem:[#allocation2 + $0x168] ss:$12 sps:$4 sm:$0xff]  }
  0x23   :  { %1457 = vmatprep.subr.bf16.mxu1 %v1609_v25  ;;  %v1625_v49 = vld [vmem:[#allocation2 + $0x98] ss:$12 sps:$4 sm:$0xff]   ;;  %v1629_v51 = vld [vmem:[#allocation2 + $0x170] ss:$12 sps:$4 sm:$0xff]   ;;  %v1634_v55 = vld [vmem:[#allocation2 + $0x248] ss:$12 sps:$4 sm:$0xff]  }
  0x24   :  { %v1628_v50 = vld [vmem:[#allocation2 + $0x16c] ss:$12 sps:$4 sm:$0xff]   ;;  %v1630_v53 = vld [vmem:[#allocation2 + $0xb0] ss:$12 sps:$4 sm:$0xff]   ;;  %v51_v58 = vsub.s32 0, %v1820_v57  ;;  %v55_v60 = vsub.s32 1, %v1820_v57 }
  0x25   :  { %860 = vmatpush1.bf16.msra.mxu0 %v1576_v13  ;;  %v1633_v54 = vld [vmem:[#allocation2 + $0x184] ss:$12 sps:$4 sm:$0xff]   ;;  %v47_v59 = vld [vmem:[%s1940_s2] sm:$0xf]  ;;  %v59_v61 = vsub.s32 2, %v1820_v57  ;;  %v63_v63 = vsub.s32 3, %v1820_v57 }
  0x26   :  { %861 = vmatprep.subr.bf16.mxu0 %v1581_v14  ;;  %1458 = vmatpush3.bf16.msra.mxu1 %v1610_v26  ;;  %v52_v62 = vrot.slane %v47_v59, %v51_v58  ;;  %v56_v0 = vrot.slane %v47_v59, %v55_v60  ;;  %v1665_v56 = vld [vmem:[#allocation2 + $0x218] ss:$12 sps:$4 sm:$0xff]   ;;  %v1712_v57 = vld [vmem:[%s1943_s5 + $0x88] sm:$0xff]   ;;  %vm1752_vm1 = vmmov 0   ;;  %vm1315_vm2 = vcmask 31744  }
  0x27   :  { %1459 = vmatprep.subr.bf16.mxu1 %v1614_v29  ;;  %v60_v2 = vrot.slane %v47_v59, %v59_v61  ;;  %v64_v5 = vrot.slane %v47_v59, %v63_v63  ;;  %v1668_v59 = vld [vmem:[#allocation2 + $0x22c] ss:$12 sps:$4 sm:$0xff]   ;;  %v1666_v63 = vld [vmem:[#allocation2 + $0x228] ss:$12 sps:$4 sm:$0xff]  }
  0x29   :  { %862 = vmatpush1.bf16.msra.mxu0 %v1579_v17 }
  0x2a   :  { %863 = vmatprep.subr.bf16.mxu0 %v1584_v20  ;;  %1460 = vmatpush3.bf16.msra.mxu1 %v1615_v31  ;;  %v1639_v31 = vld [vmem:[#allocation2 + $0x260] ss:$12 sps:$4 sm:$0xff]  }
  0x2b   :  { %1461 = vmatprep.subr.bf16.mxu1 %v1619_v33 }
  0x2d   :  { %864 = vmatpush1.bf16.msra.mxu0 %v1582_v21 }
  0x2e   :  { %865 = vmatprep.subr.bf16.mxu0 %v1587_v24  ;;  %1462 = vmatpush3.bf16.msra.mxu1 %v1620_v35  ;;  %v1636_v35 = vld [vmem:[#allocation2 + $0x198] ss:$12 sps:$4 sm:$0xff]  }
  0x2f   :  { %1463 = vmatprep.subr.bf16.mxu1 %v1624_v47  ;;  %v1651_v47 = vld [vmem:[#allocation2 + $0x1e0] ss:$12 sps:$4 sm:$0xff]  }
  0x31   :  { %866 = vmatpush1.bf16.msra.mxu0 %v1585_v27  ;;  %v1631_v27 = vld [vmem:[#allocation2 + $0x180] ss:$12 sps:$4 sm:$0xff]  }
  0x32   :  { %867 = vmatprep.subr.bf16.mxu0 %v1590_v28  ;;  %1464 = vmatpush3.bf16.msra.mxu1 %v1625_v49  ;;  %v1635_v28 = vld [vmem:[#allocation2 + $0x188] ss:$12 sps:$4 sm:$0xff]  }
  0x33   :  { %1465 = vmatprep.subr.bf16.mxu1 %v1629_v51  ;;  %v1658_v49 = vld [vmem:[#allocation2 + $0x1fc] ss:$12 sps:$4 sm:$0xff]   ;;  %v1656_v51 = vld [vmem:[#allocation2 + $0x1f8] ss:$12 sps:$4 sm:$0xff]  }
  0x35   :  { %868 = vmatpush1.bf16.msra.mxu0 %v1588_v30  ;;  %v1638_v30 = vld [vmem:[#allocation2 + $0x19c] ss:$12 sps:$4 sm:$0xff]  }
  0x36   :  { %869 = vmatprep.subr.bf16.mxu0 %v1593_v32  ;;  %1466 = vmatpush3.bf16.msra.mxu1 %v1630_v53  ;;  %v1663_v53 = vld [vmem:[#allocation2 + $0x214] ss:$12 sps:$4 sm:$0xff]  }
  0x37   :  { %1473 = vmatprep.subr.bf16.mxu1 %v1634_v55  ;;  %v1661_v55 = vld [vmem:[#allocation2 + $0x210] ss:$12 sps:$4 sm:$0xff]  }
  0x39   :  { %870 = vmatpush1.bf16.msra.mxu0 %v1591_v34 }
  0x3a   :  { %871 = vmatprep.subr.bf16.mxu0 %v1598_v36  ;;  %v1640_v36 = vld [vmem:[#allocation2 + $0x1a0] ss:$12 sps:$4 sm:$0xff]  }
  0x3d   :  { %872 = vmatpush1.bf16.msra.mxu0 %v1596_v37  ;;  %v1643_v37 = vld [vmem:[#allocation2 + $0x1b4] ss:$12 sps:$4 sm:$0xff]  }
  0x3e   :  { %873 = vmatprep.subr.bf16.mxu0 %v1603_v38  ;;  %v1644_v38 = vld [vmem:[#allocation2 + $0x278] ss:$12 sps:$4 sm:$0xff]  }
  0x41   :  { %874 = vmatpush1.bf16.msra.mxu0 %v1601_v39  ;;  %v1641_v39 = vld [vmem:[#allocation2 + $0x1b0] ss:$12 sps:$4 sm:$0xff]  }
  0x42   :  { %875 = vmatprep.subr.bf16.mxu0 %v1608_v40  ;;  %v1645_v40 = vld [vmem:[#allocation2 + $0x1b8] ss:$12 sps:$4 sm:$0xff]  }
  0x45   :  { %876 = vmatpush1.bf16.msra.mxu0 %v1606_v41  ;;  %v1648_v41 = vld [vmem:[#allocation2 + $0x1cc] ss:$12 sps:$4 sm:$0xff]  }
  0x46   :  { %877 = vmatprep.subr.bf16.mxu0 %v1613_v42  ;;  %v1649_v42 = vld [vmem:[#allocation2 + $0x290] ss:$12 sps:$4 sm:$0xff]  }
  0x49   :  { %878 = vmatpush1.bf16.msra.mxu0 %v1611_v43  ;;  %v1646_v43 = vld [vmem:[#allocation2 + $0x1c8] ss:$12 sps:$4 sm:$0xff]  }
  0x4a   :  { %879 = vmatprep.subr.bf16.mxu0 %v1618_v44  ;;  %v1650_v44 = vld [vmem:[#allocation2 + $0x1d0] ss:$12 sps:$4 sm:$0xff]  }
  0x4d   :  { %880 = vmatpush1.bf16.msra.mxu0 %v1616_v45  ;;  %v1653_v45 = vld [vmem:[#allocation2 + $0x1e4] ss:$12 sps:$4 sm:$0xff]  }
  0x4e   :  { %881 = vmatprep.subr.bf16.mxu0 %v1623_v46  ;;  %v1654_v46 = vld [vmem:[#allocation2 + $0x2a8] ss:$12 sps:$4 sm:$0xff]  }
  0x51   :  { %882 = vmatpush1.bf16.msra.mxu0 %v1621_v48  ;;  %v1655_v48 = vld [vmem:[#allocation2 + $0x1e8] ss:$12 sps:$4 sm:$0xff]  }
  0x52   :  { %883 = vmatprep.subr.bf16.mxu0 %v1628_v50  ;;  %v1659_v50 = vld [vmem:[#allocation2 + $0x2c0] ss:$12 sps:$4 sm:$0xff]  }
  0x55   :  { %884 = vmatpush1.bf16.msra.mxu0 %v1626_v52  ;;  %v1660_v52 = vld [vmem:[#allocation2 + $0x200] ss:$12 sps:$4 sm:$0xff]  }
  0x56   :  { %896 = vmatprep.subr.bf16.mxu0 %v1633_v54  ;;  %v1664_v54 = vld [vmem:[#allocation2 + $0x2d8] ss:$12 sps:$4 sm:$0xff]  }
  0xeb   :  { %v132_v1 = vpop.f32.mrb[0].mxu0  ;;  %v175_v10 = vpop.f32.mrb[0].mxu1 }
  0xec   :  { %v133_v3 = vadd.f32 %v132_v1, %v52_v62  ;;  %v134_v4 = vpop.f32.mrb[1].mxu0  ;;  %v176_v12 = vadd.f32 %v175_v10, %v60_v2  ;;  %v177_v13 = vpop.f32.mrb[1].mxu1  ;;  %v1673_v1 = vld [vmem:[#allocation2 + $0x244] ss:$12 sps:$4 sm:$0xff]   ;;  %v1683_v10 = vld [vmem:[#allocation2 + $0x2a0] ss:$12 sps:$4 sm:$0xff]  }
  0xed   :  { %v135_v6 = vadd.f32 %v134_v4, %v56_v0  ;;  %v136_v7 = vpop.f32.mrb[2].mxu0  ;;  %v178_v16 = vadd.f32 %v177_v13, %v64_v5  ;;  %v179_v17 = vpop.f32.mrb[2].mxu1  ;;  %v1674_v4 = vld [vmem:[#allocation2 + $0x258] ss:$12 sps:$4 sm:$0xff]   ;;  %v1691_v13 = vld [vmem:[#allocation2 + $0x2d4] ss:$12 sps:$4 sm:$0xff]  }
  0xee   :  { %v137_v8 = vadd.f32 %v136_v7, %v52_v62  ;;  %v138_v9 = vpop.f32.mrb[3].mxu0  ;;  %v184_v14 = vmax.f32 %v133_v3, 0.0  ;;  %v186_v20 = vmax.f32 %v176_v12, 0.0  ;;  %v180_v21 = vadd.f32 %v179_v17, %v60_v2  ;;  %v181_v22 = vpop.f32.mrb[3].mxu1  ;;  %v1669_v62 = vld [vmem:[#allocation2 + $0x2f0] ss:$12 sps:$4 sm:$0xff]  }
  0xef   :  { %v139_v11 = vadd.f32 %v138_v9, %v56_v0  ;;  %v185_v18 = vmax.f32 %v135_v6, 0.0  ;;  %v187_v24 = vmax.f32 %v178_v16, 0.0  ;;  %v182_v25 = vadd.f32 %v181_v22, %v64_v5  ;;  %v1670_v0 = vld [vmem:[#allocation2 + $0x230] ss:$12 sps:$4 sm:$0xff]   ;;  %v1671_v2 = vld [vmem:[#allocation2 + $0x240] ss:$12 sps:$4 sm:$0xff]  }
  0xf0   :  { %v188_v15 = vmax.f32 %v137_v8, 0.0  ;;  %v190_v29 = vmax.f32 %v180_v21, 0.0  ;;  %v1676_v3 = vld [vmem:[#allocation2 + $0x25c] ss:$12 sps:$4 sm:$0xff]   ;;  %v1679_v5 = vld [vmem:[#allocation2 + $0x274] ss:$12 sps:$4 sm:$0xff]  }
  0xf1   :  { %v189_v19 = vmax.f32 %v139_v11, 0.0  ;;  %v191_v32 = vmax.f32 %v182_v25, 0.0  ;;  %v1677_v6 = vld [vmem:[#allocation2 + $0x270] ss:$12 sps:$4 sm:$0xff]   ;;  %v1682_v7 = vld [vmem:[#allocation2 + $0x28c] ss:$12 sps:$4 sm:$0xff]  }
  0xf2   :  { %v192_v23 = vpack.c.bf16 %v188_v15, %v184_v14  ;;  %v1835_v33 = vpack.c.bf16 %v190_v29, %v186_v20  ;;  %v1680_v8 = vld [vmem:[#allocation2 + $0x288] ss:$12 sps:$4 sm:$0xff]   ;;  %v1685_v9 = vld [vmem:[#allocation2 + $0x2a4] ss:$12 sps:$4 sm:$0xff]   ;;  %v1694_v15 = vld [vmem:[#allocation2 + $0x2ec] ss:$12 sps:$4 sm:$0xff]  }
  0xf3   :  { %v193_v26 = vpack.c.bf16 %v189_v19, %v185_v18  ;;  %v195_v34 = vpack.c.bf16 %v191_v32, %v187_v24  ;;  %v1688_v11 = vld [vmem:[#allocation2 + $0x2bc] ss:$12 sps:$4 sm:$0xff]   ;;  %v1686_v12 = vld [vmem:[#allocation2 + $0x2b8] ss:$12 sps:$4 sm:$0xff]   ;;  %v1699_v21 = vld [vmem:[%s1943_s5 + $0x50] sm:$0xff]  }
  0xf4   :  { %v1689_v14 = vld [vmem:[#allocation2 + $0x2d0] ss:$12 sps:$4 sm:$0xff]   ;;  %v1692_v16 = vld [vmem:[#allocation2 + $0x2e8] ss:$12 sps:$4 sm:$0xff]   ;;  %v1695_v17 = vld [vmem:[%s1943_s5 + $0x40] sm:$0xff]  }
  0xf5   :  { %885 = vmatprep.mubr.bf16.mxu0 %v193_v26  ;;  %971 = vmatprep.mubr.bf16.mxu1 %v193_v26  ;;  %v1696_v18 = vld [vmem:[%s1943_s5] sm:$0xff]   ;;  %v1697_v19 = vld [vmem:[%s1943_s5 + $0x48] sm:$0xff]   ;;  %v1700_v22 = vld [vmem:[%s1943_s5 + $0x10] sm:$0xff]  }
  0xf6   :  { %886 = vmatmul.mubr.bf16.vlgmr.msra.gmra.mrb[4].mxu0 %v192_v23  ;;  %972 = vmatmul.mubr.bf16.vlgmr.msra.gmra.mrb[4].mxu1 %v192_v23  ;;  %v1698_v20 = vld [vmem:[%s1943_s5 + $0x8] sm:$0xff]   ;;  %v1701_v23 = vld [vmem:[%s1943_s5 + $0x58] sm:$0xff]   ;;  %v1703_v25 = vld [vmem:[%s1943_s5 + $0x60] sm:$0xff]  }
  0xf7   :  { %897 = vmatpush1.bf16.msra.mxu0 %v1631_v27  ;;  %1474 = vmatpush3.bf16.msra.mxu1 %v1635_v28  ;;  %v1702_v24 = vld [vmem:[%s1943_s5 + $0x18] sm:$0xff]   ;;  %v1704_v26 = vld [vmem:[%s1943_s5 + $0x20] sm:$0xff]   ;;  %v1705_v27 = vld [vmem:[%s1943_s5 + $0x68] sm:$0xff]  }
  0xf8   :  { %898 = vmatprep.subr.bf16.mxu0 %v1638_v30  ;;  %1475 = vmatprep.subr.bf16.mxu1 %v1639_v31  ;;  %v1706_v28 = vld [vmem:[%s1943_s5 + $0x28] sm:$0xff]   ;;  %v1707_v29 = vld [vmem:[%s1943_s5 + $0x70] sm:$0xff]   ;;  %v1709_v31 = vld [vmem:[%s1943_s5 + $0x78] sm:$0xff]  }
  0xf9   :  { %1012 = vmatprep.mubr.bf16.mxu1 %v195_v34  ;;  %928 = vmatprep.mubr.bf16.mxu0 %v195_v34  ;;  %v1708_v30 = vld [vmem:[%s1943_s5 + $0x30] sm:$0xff]   ;;  %v1710_v32 = vld [vmem:[%s1943_s5 + $0x38] sm:$0xff]  }
  0xfb   :  { %899 = vmatpush1.bf16.msra.mxu0 %v1636_v35  ;;  %1476 = vmatpush3.bf16.msra.mxu1 %v1640_v36 }
  0xfc   :  { %900 = vmatprep.subr.bf16.mxu0 %v1643_v37  ;;  %1477 = vmatprep.subr.bf16.mxu1 %v1644_v38 }
  0xff   :  { %901 = vmatpush1.bf16.msra.mxu0 %v1641_v39  ;;  %1478 = vmatpush3.bf16.msra.mxu1 %v1645_v40  ;;  %v324_v40 = vld [vmem:[%s1942_s4] sm:$0x7] }
 0x100   :  { %902 = vmatprep.subr.bf16.mxu0 %v1648_v41  ;;  %1479 = vmatprep.subr.bf16.mxu1 %v1649_v42  ;;  %v337_v41 = vrot.slane %v324_v40, %v59_v61 }
 0x103   :  { %903 = vmatpush1.bf16.msra.mxu0 %v1646_v43  ;;  %1480 = vmatpush3.bf16.msra.mxu1 %v1650_v44 }
 0x104   :  { %904 = vmatprep.subr.bf16.mxu0 %v1653_v45  ;;  %1481 = vmatprep.subr.bf16.mxu1 %v1654_v46 }
 0x107   :  { %905 = vmatpush1.bf16.msra.mxu0 %v1651_v47  ;;  %1482 = vmatpush3.bf16.msra.mxu1 %v1655_v48 }
 0x108   :  { %906 = vmatprep.subr.bf16.mxu0 %v1658_v49  ;;  %1483 = vmatprep.subr.bf16.mxu1 %v1659_v50 }
 0x10b   :  { %907 = vmatpush1.bf16.msra.mxu0 %v1656_v51  ;;  %1484 = vmatpush3.bf16.msra.mxu1 %v1660_v52 }
 0x10c   :  { %908 = vmatprep.subr.bf16.mxu0 %v1663_v53  ;;  %1485 = vmatprep.subr.bf16.mxu1 %v1664_v54 }
 0x10f   :  { %909 = vmatpush1.bf16.msra.mxu0 %v1661_v55  ;;  %1486 = vmatpush3.bf16.msra.mxu1 %v1665_v56  ;;  %v329_v55 = vrot.slane %v324_v40, %v51_v58  ;;  %v333_v56 = vrot.slane %v324_v40, %v55_v60  ;;  %v1711_v58 = vld [vmem:[%s1943_s5 + $0x80] sm:$0xff]   ;;  %v1713_v60 = vld [vmem:[%s1943_s5 + $0x90] sm:$0xff]  }
 0x110   :  { %910 = vmatprep.subr.bf16.mxu0 %v1668_v59  ;;  %1487 = vmatprep.subr.bf16.mxu1 %v1669_v62 }
 0x113   :  { %911 = vmatpush1.bf16.msra.mxu0 %v1666_v63  ;;  %1488 = vmatpush3.bf16.msra.mxu1 %v1670_v0 }
 0x114   :  { %912 = vmatprep.subr.bf16.mxu0 %v1673_v1  ;;  %1495 = vmatprep.subr.bf16.mxu1 %v1695_v17 }
 0x116   :  { %1013 = vmatmul.mubr.bf16.vlgmr.msra.gmra.mrb[8].mxu1 %v1835_v33 }
 0x117   :  { %913 = vmatpush1.bf16.msra.mxu0 %v1671_v2  ;;  %1496 = vmatpush3.bf16.msra.mxu1 %v1696_v18 }
 0x118   :  { %914 = vmatprep.subr.bf16.mxu0 %v1676_v3  ;;  %1497 = vmatprep.subr.bf16.mxu1 %v1697_v19 }
 0x11b   :  { %915 = vmatpush1.bf16.msra.mxu0 %v1674_v4  ;;  %1498 = vmatpush3.bf16.msra.mxu1 %v1698_v20 }
 0x11c   :  { %916 = vmatprep.subr.bf16.mxu0 %v1679_v5  ;;  %1499 = vmatprep.subr.bf16.mxu1 %v1699_v21  ;;  %v1426_v21 = vld [vmem:[%s1944_s6] ss:$0 sm:$0xff] }
 0x11f   :  { %917 = vmatpush1.bf16.msra.mxu0 %v1677_v6  ;;  %1500 = vmatpush3.bf16.msra.mxu1 %v1700_v22 }
 0x120   :  { %918 = vmatprep.subr.bf16.mxu0 %v1682_v7  ;;  %1501 = vmatprep.subr.bf16.mxu1 %v1701_v23 }
 0x123   :  { %919 = vmatpush1.bf16.msra.mxu0 %v1680_v8  ;;  %1502 = vmatpush3.bf16.msra.mxu1 %v1702_v24 }
 0x124   :  { %920 = vmatprep.subr.bf16.mxu0 %v1685_v9  ;;  %1503 = vmatprep.subr.bf16.mxu1 %v1703_v25 }
 0x127   :  { %921 = vmatpush1.bf16.msra.mxu0 %v1683_v10  ;;  %1504 = vmatpush3.bf16.msra.mxu1 %v1704_v26  ;;  %v1714_v10 = vld [vmem:[%s1943_s5 + $0x98] sm:$0xff]  }
 0x128   :  { %922 = vmatprep.subr.bf16.mxu0 %v1688_v11  ;;  %1505 = vmatprep.subr.bf16.mxu1 %v1705_v27  ;;  %v1715_v11 = vld [vmem:[%s1943_s5 + $0xa0] sm:$0xff]  }
 0x12b   :  { %923 = vmatpush1.bf16.msra.mxu0 %v1686_v12  ;;  %1506 = vmatpush3.bf16.msra.mxu1 %v1706_v28  ;;  %v1716_v12 = vld [vmem:[%s1943_s5 + $0xa8] sm:$0xff]  }
 0x12c   :  { %924 = vmatprep.subr.bf16.mxu0 %v1691_v13  ;;  %1507 = vmatprep.subr.bf16.mxu1 %v1707_v29  ;;  %v1717_v13 = vld [vmem:[%s1943_s5 + $0xb0] sm:$0xff]  }
 0x12f   :  { %925 = vmatpush1.bf16.msra.mxu0 %v1689_v14  ;;  %1508 = vmatpush3.bf16.msra.mxu1 %v1708_v30  ;;  %v1718_v14 = vld [vmem:[%s1943_s5 + $0xb8] sm:$0xff]  }
 0x130   :  { %926 = vmatprep.subr.bf16.mxu0 %v1694_v15  ;;  %1509 = vmatprep.subr.bf16.mxu1 %v1709_v31 }
 0x133   :  { %927 = vmatpush1.bf16.msra.mxu0 %v1692_v16  ;;  %1510 = vmatpush3.bf16.msra.mxu1 %v1710_v32 }
 0x136   :  { %929 = vmatmul.mubr.bf16.vlgmr.msra.gmra.mrb[4].mxu0 %v1835_v33  ;;  %v1751_v33 = vmov 0.0  }
 0x137   :  { %1526 = vmatprep.subr.bf16.mxu1 %v1751_v33 }
 0x1c9   :  { %v1467_v34 = vpop.f32.mrb[4].mxu1 }
 0x1ca   :  { %v1468_v35 = vpop.f32.mrb[5].mxu1 }
 0x1cb   :  { %v1469_v36 = vadd.f32 %v1468_v35, %v1467_v34  ;;  %v1470_v37 = vpop.f32.mrb[6].mxu1 }
 0x1cc   :  { %v1471_v38 = vpop.f32.mrb[7].mxu1 }
 0x1cd   :  { %v1472_v39 = vadd.f32 %v1471_v38, %v1470_v37  ;;  %v974_v44 = vadd.f32 %v1469_v36, %v337_v41 }
 0x1cf   :  { %v977_v48 = vadd.f32 %v1472_v39, %v337_v41 }
 0x1e9   :  { %v1489_v42 = vpop.f32.mrb[8].mxu1 }
 0x1ea   :  { %v1490_v43 = vpop.f32.mrb[9].mxu1 }
 0x1eb   :  { %v1491_v45 = vadd.f32 %v1490_v43, %v1489_v42  ;;  %v1492_v46 = vpop.f32.mrb[10].mxu1 }
 0x1ec   :  { %v1493_v47 = vpop.f32.mrb[11].mxu1 }
 0x1ed   :  { %v1015_v49 = vadd.f32 %v1491_v45, %v974_v44  ;;  %v1494_v50 = vadd.f32 %v1493_v47, %v1492_v46 }
 0x1ef   :  { %v1018_v51 = vadd.f32 %v1494_v50, %v977_v48  ;;  %v1023_v52 = vmax.f32 %v1015_v49, 0.0 }
 0x1f1   :  { %v1026_v53 = vmax.f32 %v1018_v51, 0.0 }
 0x1f3   :  { %v1029_v54 = vpack.c.bf16 %v1026_v53, %v1023_v52 }
 0x209   :  { %v930_v61 = vpop.f32.mrb[4].mxu0 }
 0x20a   :  { %v1546_v59 = vadd.f32 %v930_v61, %v329_v55  ;;  %v932_v62 = vpop.f32.mrb[5].mxu0 }
 0x20b   :  { %v1547_v63 = vadd.f32 %v932_v62, %v333_v56  ;;  %v934_v0 = vpop.f32.mrb[6].mxu0 }
 0x20c   :  { %v1548_v1 = vadd.f32 %v934_v0, %v329_v55  ;;  %v936_v2 = vpop.f32.mrb[7].mxu0  ;;  %v1021_v4 = vmax.f32 %v1546_v59, 0.0 }
 0x20d   :  { %v1549_v3 = vadd.f32 %v936_v2, %v333_v56  ;;  %v1022_v6 = vmax.f32 %v1547_v63, 0.0 }
 0x20e   :  { %v1024_v5 = vmax.f32 %v1548_v1, 0.0 }
 0x20f   :  { %v1025_v7 = vmax.f32 %v1549_v3, 0.0 }
 0x210   :  { %v1027_v8 = vpack.c.bf16 %v1024_v5, %v1021_v4 }
 0x211   :  { %v1028_v9 = vpack.c.bf16 %v1025_v7, %v1022_v6 }
 0x213   :  { %1261 = vmatprep.mubr.bf16.mxu1 %v1028_v9 }
 0x214   :  { %1262 = vmatmul.mubr.bf16.vlgmr.msra.gmra.mrb[12].mxu1 %v1027_v8 }
 0x215   :  { %1527 = vmatpush3.bf16.msra.mxu1 %v1711_v58  ;;  %1542 = vmatprep.mubr.msk.bf16.mxu1 %vm1752_vm1, %v1751_v33 }
 0x216   :  { %1528 = vmatprep.subr.bf16.mxu1 %v1751_v33 }
 0x219   :  { %1529 = vmatpush3.bf16.msra.mxu1 %v1712_v57 }
 0x21a   :  { %1530 = vmatprep.subr.bf16.mxu1 %v1751_v33 }
 0x21d   :  { %1531 = vmatpush3.bf16.msra.mxu1 %v1713_v60 }
 0x21e   :  { %1532 = vmatprep.subr.bf16.mxu1 %v1751_v33 }
 0x221   :  { %1533 = vmatpush3.bf16.msra.mxu1 %v1714_v10 }
 0x222   :  { %1534 = vmatprep.subr.bf16.mxu1 %v1751_v33 }
 0x225   :  { %1535 = vmatpush3.bf16.msra.mxu1 %v1715_v11 }
 0x226   :  { %1536 = vmatprep.subr.bf16.mxu1 %v1751_v33 }
 0x229   :  { %1537 = vmatpush3.bf16.msra.mxu1 %v1716_v12 }
 0x22a   :  { %1538 = vmatprep.subr.bf16.mxu1 %v1751_v33 }
 0x22d   :  { %1539 = vmatpush3.bf16.msra.mxu1 %v1717_v13 }
 0x22e   :  { %1540 = vmatprep.subr.bf16.mxu1 %v1751_v33 }
 0x231   :  { %1541 = vmatpush3.bf16.msra.mxu1 %v1718_v14 }
 0x234   :  { %1543 = vmatmul.mubr.bf16.vlgmr.msra.gmra.mrb[16].mxu1 %v1029_v54 }
 0x2e7   :  { %v1511_v15 = vpop.f32.mrb[12].mxu1 }
 0x2e8   :  { %v1512_v16 = vpop.f32.mrb[13].mxu1 }
 0x2e9   :  { %v1513_v17 = vadd.f32 %v1512_v16, %v1511_v15  ;;  %v1514_v18 = vpop.f32.mrb[14].mxu1 }
 0x2ea   :  { %v1515_v19 = vpop.f32.mrb[15].mxu1 }
 0x2eb   :  { %v1516_v20 = vadd.f32 %v1515_v19, %v1514_v18  ;;  %v1264_v22 = vadd.f32 %v1513_v17, %v1426_v21 }
 0x2ed   :  { %v1267_v26 = vadd.f32 %v1516_v20, %v1426_v21 }
 0x307   :  { %v1304_v23 = vpop.f32.mrb[16].mxu1 }
 0x308   :  { %v1305_v24 = vadd.f32 %v1304_v23, %v1264_v22  ;;  %v1544_v25 = vpop.f32.mrb[17].mxu1 }
 0x309   :  { %v1307_v27 = vpop.f32.mrb[18].mxu1 }
 0x30a   :  { %1719 = vtanh.f32 %v1305_v24  ;;  %v1308_v28 = vadd.f32 %v1307_v27, %v1267_v26  ;;  %v1545_v29 = vpop.f32.mrb[19].mxu1 }
 0x30c   :  { %1721 = vtanh.f32 %v1308_v28 }
 0x314   :  { %v1720_v30 = vpop.eup %1719 }
 0x315   :  { %v1313_v31 = vmul.f32 2.0, %v1720_v30 }
 0x316   :  { %v1722_v32 = vpop.eup %1721 }
 0x317   :  { %1316 = vst.msk [vmem:[%s1945_s7] sm:$0xff] %vm1315_vm2, %v1313_v31  ;;  %v1314_v33 = vmul.f32 2.0, %v1722_v32 }
 0x319   :  { %1317 = vst.msk [vmem:[%s1945_s7 + $0x8] sm:$0xff] %vm1315_vm2, %v1314_v33 }
 0x31a   :  { %1322 = vsyncpa [#allocation3], 1 }

</bundles_post_ra>
